<compile_context>
chip_gen: v7x
topology: tpu7x:2x2x1
jax: 0.10.0
libtpu: 0.0.40
codegen_flags: <defaults>
</compile_context>

<pallas_src>
import math

import jax
import jax.numpy as jnp
from jax.experimental import pallas as pl
from jax.experimental.pallas import tpu as pltpu


N_TILE = 4096          # batch lanes per grid step (multiple of 128)
HIDDEN = 64
USE_BF16_MXU = False   # True: cast layer-2 matmul inputs to bf16 (f32 accumulate),
                       # ~2-3x MXU throughput, ~1e-2 relative error.


def _mlp_kernel(x_ref, cols_ref, w2_ref, b3_ref, o_ref):
    # Transposed layout: sublanes = features, lanes = batch (dense).
    xT = x_ref[...]                                         # (1, NT)

    cols = cols_ref[...]                                    # (64, 4) packed columns
    w1 = cols[:, 0:1]                                       # (64, 1)
    b1 = cols[:, 1:2]
    b2 = cols[:, 2:3]
    w3 = cols[:, 3:4]

    # Layer 1: Linear(1, 64).  K=1 contraction == rank-1 outer product ->
    # VPU broadcast multiply-add (keeps the MXU free).
    h1 = jnp.maximum(w1 * xT + b1, 0.0)                     # (64, NT)

    # Layer 2: Linear(64, 64) on the MXU, lane-dense output, f32 accumulate.
    w2 = w2_ref[...]
    if USE_BF16_MXU:
        w2 = w2.astype(jnp.bfloat16)
        h1 = h1.astype(jnp.bfloat16)
    h2 = jnp.dot(w2, h1, preferred_element_type=jnp.float32)  # (64, NT)
    h2 = jnp.maximum(h2 + b2, 0.0)

    # Layer 3: Linear(64, 1).  Output width 1 -> VPU multiply + cross-sublane
    # (XLU) reduce instead of a width-1 MXU matmul.
    y = jnp.sum(h2 * w3, axis=0, keepdims=True)             # (1, NT)
    o_ref[...] = y + b3_ref[0, 0]


def sine_net_forward(x, packed_params):
    """x: (N, 1) float32 -> (N, 1) float32."""
    cols, w2, b3 = packed_params
    n = x.shape[0]

    # Lane-dense transposed view; (N,1)->(1,N) is a pure layout no-op (no HBM pass).
    xT = x.reshape(1, n)

    # Small batches: one block spanning the whole array (block == full dim, no
    # padding needed).  Large batches: fixed 4096-lane tiles; Pallas masks the
    # ragged final block's writes, so no wrapper-side pad/slice is required.
    tile = n if n <= N_TILE else N_TILE
    grid = (pl.cdiv(n, tile),)

    flops = n * (2 * HIDDEN + 2 * HIDDEN * HIDDEN + 2 * HIDDEN)
    bytes_accessed = 8 * n + 4 * (cols.size + w2.size + b3.size)

    out_t = pl.pallas_call(
        _mlp_kernel,
        out_shape=jax.ShapeDtypeStruct((1, n), jnp.float32),
        grid=grid,
        in_specs=[
            pl.BlockSpec((1, tile), lambda i: (0, i)),          # x batch tile
            pl.BlockSpec(cols.shape, lambda i: (0, 0)),         # packed (64,4) columns, VMEM-resident
            pl.BlockSpec(w2.shape, lambda i: (0, 0)),           # (64,64) weight, VMEM-resident
            pl.BlockSpec(memory_space=pltpu.MemorySpace.SMEM),  # b3 scalar
        ],
        out_specs=pl.BlockSpec((1, tile), lambda i: (0, i)),    # lane-dense output
        compiler_params=pltpu.CompilerParams(
            dimension_semantics=("parallel",),      # 2-TC sharding on v7x
            vmem_limit_bytes=32 * 1024 * 1024,      # safe on 64 MiB (v7x) physical VMEM
        ),
        cost_estimate=pl.CostEstimate(
            flops=flops, transcendentals=0, bytes_accessed=bytes_accessed),
    )(xT, cols, w2, b3)

    # (1,N)->(N,1) is again a pure layout no-op.
    return out_t.reshape(n, 1)


def init_params(key):
    """PyTorch nn.Linear default init U(-1/sqrt(fan_in), +), torch layout."""
    ks = jax.random.split(key, 6)

    def uni(k, shape, fan_in):
        bound = 1.0 / math.sqrt(fan_in)
        return jax.random.uniform(k, shape, jnp.float32, -bound, bound)

    w1 = uni(ks[0], (HIDDEN, 1), 1)
    b1 = uni(ks[1], (HIDDEN,), 1)
    w2 = uni(ks[2], (HIDDEN, HIDDEN), HIDDEN)
    b2 = uni(ks[3], (HIDDEN,), HIDDEN)
    w3 = uni(ks[4], (1, HIDDEN), HIDDEN)
    b3 = uni(ks[5], (1,), HIDDEN)
    return (w1, b1, w2, b2, w3, b3)


def pack_params(params):
    """Pack the four (64,)-column vectors into one resident (64,4) array."""
    w1, b1, w2, b2, w3, b3 = params
    cols = jnp.stack([w1[:, 0], b1, b2, w3[0, :]], axis=1)  # (64, 4)
    return (cols, w2, b3.reshape(1, 1))


def reference_forward(x, params):
    w1, b1, w2, b2, w3, b3 = params
    h1 = jnp.maximum(x @ w1.T + b1, 0.0)
    h2 = jnp.maximum(h1 @ w2.T + b2, 0.0)
    return h2 @ w3.T + b3


if __name__ == "__main__":
    key = jax.random.PRNGKey(0)
    pkey, xkey1, xkey2 = jax.random.split(key, 3)
    params = init_params(pkey)
    packed = pack_params(params)

    fwd = jax.jit(sine_net_forward)
    tol = 2e-2 if USE_BF16_MXU else 1e-4

    # Small batch of scalar inputs (single full-array block path).
    x_small = jax.random.uniform(xkey1, (8, 1), jnp.float32, -math.pi, math.pi)
    out = jax.block_until_ready(fwd(x_small, packed))
    ref = reference_forward(x_small, params)
    assert out.shape == (8, 1)
    assert jnp.allclose(out, ref, atol=tol, rtol=tol), (out, ref)

    # Ragged multi-tile batch (exercises tiling + masked edge block, no padding).
    n_big = 2 * N_TILE + 160
    x_big = jax.random.uniform(xkey2, (n_big, 1), jnp.float32, -math.pi, math.pi)
    out_big = jax.block_until_ready(fwd(x_big, packed))
    ref_big = reference_forward(x_big, params)
    assert out_big.shape == (n_big, 1)
    assert jnp.allclose(out_big, ref_big, atol=tol, rtol=tol)

    print("KERNEL_OK")
</pallas_src>

<mosaic_0001>
module attributes {stable_mosaic.version = 11 : i64} {
  func.func @_mlp_kernel(%arg0: i32, %arg1: memref<1x8xf32, #tpu.memory_space<vmem>>, %arg2: memref<64x4xf32, #tpu.memory_space<vmem>>, %arg3: memref<64x64xf32, #tpu.memory_space<vmem>>, %arg4: memref<1x1xf32, #tpu.memory_space<smem>>, %arg5: memref<1x8xf32, #tpu.memory_space<vmem>>) attributes {dimension_semantics = [#tpu.dimension_semantics<parallel>], iteration_bounds = array<i64: 1>, scalar_prefetch = 0 : i64, scratch_operands = 0 : i64, tpu.core_type = #tpu.core_type<tc>, window_params = [{transform_indices = @transform_0, window_bounds = array<i64: 1, 8>}, {pipeline_mode = #tpu.pipeline_mode<synchronous>, transform_indices = @transform_1, window_bounds = array<i64: 64, 4>}, {pipeline_mode = #tpu.pipeline_mode<synchronous>, transform_indices = @transform_2, window_bounds = array<i64: 64, 64>}, {transform_indices = @transform_3, window_bounds = array<i64: 1, 1>}, {transform_indices = @transform_4, window_bounds = array<i64: 1, 8>}]} {
    %c0 = arith.constant 0 : index
    %c0_0 = arith.constant 0 : index
    %0 = vector.load %arg1[%c0, %c0_0] : memref<1x8xf32, #tpu.memory_space<vmem>>, vector<1x8xf32>
    %c0_1 = arith.constant 0 : index
    %c0_2 = arith.constant 0 : index
    %1 = vector.load %arg2[%c0_1, %c0_2] : memref<64x4xf32, #tpu.memory_space<vmem>>, vector<64x4xf32>
    %2 = vector.extract_strided_slice %1 {offsets = [0, 0], sizes = [64, 1], strides = [1, 1]} : vector<64x4xf32> to vector<64x1xf32>
    %3 = vector.extract_strided_slice %1 {offsets = [0, 1], sizes = [64, 1], strides = [1, 1]} : vector<64x4xf32> to vector<64x1xf32>
    %4 = vector.extract_strided_slice %1 {offsets = [0, 2], sizes = [64, 1], strides = [1, 1]} : vector<64x4xf32> to vector<64x1xf32>
    %5 = vector.extract_strided_slice %1 {offsets = [0, 3], sizes = [64, 1], strides = [1, 1]} : vector<64x4xf32> to vector<64x1xf32>
    %6 = vector.broadcast %2 : vector<64x1xf32> to vector<64x8xf32>
    %7 = vector.broadcast %0 : vector<1x8xf32> to vector<64x8xf32>
    %8 = arith.mulf %6, %7 : vector<64x8xf32>
    %9 = vector.broadcast %3 : vector<64x1xf32> to vector<64x8xf32>
    %10 = arith.addf %8, %9 : vector<64x8xf32>
    %cst = arith.constant 0.000000e+00 : f32
    %11 = vector.broadcast %cst : f32 to vector<64x8xf32>
    %12 = arith.maximumf %10, %11 : vector<64x8xf32>
    %c0_3 = arith.constant 0 : index
    %c0_4 = arith.constant 0 : index
    %13 = vector.load %arg3[%c0_3, %c0_4] : memref<64x64xf32, #tpu.memory_space<vmem>>, vector<64x64xf32>
    %cst_5 = arith.constant dense<0.000000e+00> : vector<64x8xf32>
    %14 = tpu.matmul %13, %12, %cst_5 {dimension_numbers = #tpu.dot_dimension_numbers<[1], [0], [0], [1], [0, 0, 1, 1], [], []>} : vector<64x64xf32>, vector<64x8xf32>, vector<64x8xf32> -> vector<64x8xf32>
    %15 = vector.broadcast %4 : vector<64x1xf32> to vector<64x8xf32>
    %16 = arith.addf %14, %15 : vector<64x8xf32>
    %cst_6 = arith.constant 0.000000e+00 : f32
    %17 = vector.broadcast %cst_6 : f32 to vector<64x8xf32>
    %18 = arith.maximumf %16, %17 : vector<64x8xf32>
    %19 = vector.broadcast %5 : vector<64x1xf32> to vector<64x8xf32>
    %20 = arith.mulf %18, %19 : vector<64x8xf32>
    %cst_7 = arith.constant dense<0.000000e+00> : vector<8xf32>
    %21 = vector.multi_reduction <add>, %20, %cst_7 [0] : vector<64x8xf32> to vector<8xf32>
    %22 = vector.shape_cast %21 : vector<8xf32> to vector<1x8xf32>
    %c0_8 = arith.constant 0 : index
    %c0_9 = arith.constant 0 : index
    %23 = memref.load %arg4[%c0_8, %c0_9] : memref<1x1xf32, #tpu.memory_space<smem>>
    %24 = vector.broadcast %23 : f32 to vector<1x8xf32>
    %25 = arith.addf %22, %24 : vector<1x8xf32>
    %c0_10 = arith.constant 0 : index
    %c0_11 = arith.constant 0 : index
    %26 = vector.load %arg5[%c0_10, %c0_11] : memref<1x8xf32, #tpu.memory_space<vmem>>, vector<1x8xf32>
    tpu.vector_store %arg5[%c0_10, %c0_11], %25 {strides = array<i32>} : memref<1x8xf32, #tpu.memory_space<vmem>>, vector<1x8xf32>,
    return
  }
  func.func @transform_0(%arg0: i32) -> (i32, i32) {
    %c0_i32 = arith.constant 0 : i32
    %c0_i32_0 = arith.constant 0 : i32
    return %c0_i32, %arg0 : i32, i32
  }
  func.func @transform_1(%arg0: i32) -> (i32, i32) {
    %c0_i32 = arith.constant 0 : i32
    %c0_i32_0 = arith.constant 0 : i32
    %c0_i32_1 = arith.constant 0 : i32
    return %c0_i32, %c0_i32_0 : i32, i32
  }
  func.func @transform_2(%arg0: i32) -> (i32, i32) {
    %c0_i32 = arith.constant 0 : i32
    %c0_i32_0 = arith.constant 0 : i32
    %c0_i32_1 = arith.constant 0 : i32
    return %c0_i32, %c0_i32_0 : i32, i32
  }
  func.func @transform_3(%arg0: i32) -> (i32, i32) {
    %c0_i32 = arith.constant 0 : i32
    %c0_i32_0 = arith.constant 0 : i32
    %c0_i32_1 = arith.constant 0 : i32
    return %c0_i32, %c0_i32_0 : i32, i32
  }
  func.func @transform_4(%arg0: i32) -> (i32, i32) {
    %c0_i32 = arith.constant 0 : i32
    %c0_i32_0 = arith.constant 0 : i32
    return %c0_i32, %arg0 : i32, i32
  }
}

</mosaic_0001>

<bundles_post_ra>
// kernel: sine_net_forward.1
= control target key start
LH: loop header
LB: loop body
LE: loop exit
PB: predicated region body
PF: predicated region fallthrough
CT: control target
= control target key end

     0   :  { %v511_v2 = vmov 1   ;;  %s623_s0 = inlined_call_operand.vmem [shape: f32[1,8], index: 0, kind: input, shape index: {}]   ;;  %s624_s1 = inlined_call_operand.vmem [shape: f32[64,4], index: 1, kind: input, shape index: {}]   ;;  %s625_s2 = inlined_call_operand.vmem [shape: f32[64,64], index: 2, kind: input, shape index: {}]   ;;  %s626_s3 = inlined_call_operand.<no memory space> [shape: f32[1,1], index: 3, kind: input, shape index: {}]   ;;  %s627_s4 = inlined_call_operand.hbm [shape: f32[1,8], index: 4, kind: output, shape index: {}]  }
   0x1   :  { %v22_v0 = vld [vmem:[%s624_s1 + $0x10] sm:$0xff]  ;;  %v20_v1 = vld [vmem:[%s624_s1] sm:$0xff]  ;;  %473 = vset.pattern.permute.xlu0 %v511_v2  ;;  %471 = vset.pattern.permute.xlu1 %v511_v2 }
   0x2   :  { %91 = vperm.xlu0 %473, %v22_v0   ;;  %83 = vperm.xlu1 %471, %v20_v1  }
   0x3   :  { %10 = vsyncpa [#allocation4], 0  ;;  %v21_v3 = vld [vmem:[%s624_s1 + $0x8] sm:$0xff]  ;;  %v512_v4 = vmov 0   ;;  %v23_v5 = vld [vmem:[%s624_s1 + $0x18] sm:$0xff]  ;;  %vm170_vm0 = vcmask 523264  }
   0x4   :  { %v25_v6 = vld [vmem:[%s624_s1 + $0x28] sm:$0xff]  ;;  %v24_v7 = vld [vmem:[%s624_s1 + $0x20] sm:$0xff]  ;;  %v26_v8 = vld [vmem:[%s624_s1 + $0x30] sm:$0xff]  ;;  %v513_v12 = vmov 2   ;;  %v514_v13 = vmov 3   ;;  %vm348_vm1 = vcmask 64512  }
   0x5   :  { %v27_v9 = vld [vmem:[%s624_s1 + $0x38] sm:$0xff]  ;;  %v130_v10 = vld [vmem:[%s625_s2] sm:$0xff]  ;;  %v131_v59 = vld [vmem:[%s625_s2 + $0x8] sm:$0xff]  ;;  %s515_s22 = smov [#allocation3]   ;;  %vm373_vm2 = vcmask 57344  }
   0x6   :  { %474 = vset.pattern.permute.xlu0 %v512_v4  ;;  %87 = vperm.xlu1 %471, %v21_v3   ;;  %v134_v11 = vld [vmem:[%s625_s2 + $0x20] sm:$0xff]  ;;  %v135_v60 = vld [vmem:[%s625_s2 + $0x28] sm:$0xff]  ;;  %v132_v61 = vld [vmem:[%s625_s2 + $0x10] sm:$0xff]  ;;  %s381_s23 = sshll.u32 %s515_s22, 4  ;;  %s382_s23 = int_to_ptr.vmem [resolvable:$true] %s381_s23 }
   0x7   :  { %30 = vperm.xlu0 %474, %v20_v1   ;;  %430 = vmatprep.mubr.msk.f32.mxu0 %vm170_vm0, %v130_v10  ;;  %v389_v16 = vld [vmem:[%s623_s0] ss:$0 sm:$0xff]  ;;  %v136_v62 = vld [vmem:[%s625_s2 + $0x30] sm:$0xff]  ;;  %v133_v63 = vld [vmem:[%s625_s2 + $0x18] sm:$0xff]  ;;  %s487_s24 = scalar_lea.vmem %s382_s23, 16  ;;  %s491_s25 = scalar_lea.vmem %s382_s23, 32 }
   0x8   :  { %436 = vmatprep.mubr.msk.f32.mxu1 %vm170_vm0, %v134_v11  ;;  %p488_p0 = scmp.ne.s32.totalorder %s382_s23, %s487_s24  ;;  %p492_p1 = scmp.lt.s32.totalorder %s382_s23, %s382_s23 }
   0x9   :  { %p493_p2 = scmp.lt.s32.totalorder %s491_s25, %s487_s24 }
   0xa   :  { %472 = vset.pattern.permute.xlu1 %v512_v4 }
   0xb   :  { %35 = vperm.xlu0 %474, %v21_v3   ;;  %45 = vperm.xlu1 %472, %v23_v5   ;;  %p494_p3 = por %p493_p2, %p492_p1 }
   0xd   :  { %p495_p4 = pnand %p494_p3, %p488_p0 }
   0xf   :  { %40 = vperm.xlu0 %474, %v22_v0   ;;  %475 = vset.pattern.permute.xlu1 %v511_v2 }
  0x10   :  { %95 = vperm.xlu1 %475, %v23_v5  }
  0x13   :  { %55 = vperm.xlu0 %474, %v25_v6  }
  0x14   :  { %476 = vset.pattern.permute.xlu1 %v512_v4 }
  0x15   :  { %50 = vperm.xlu1 %476, %v24_v7  }
  0x17   :  { %60 = vperm.xlu0 %474, %v26_v8  }
  0x19   :  { %477 = vset.pattern.permute.xlu1 %v511_v2 }
  0x1a   :  { %99 = vperm.xlu1 %477, %v24_v7  }
  0x1b   :  { %479 = vset.pattern.permute.xlu0 %v511_v2 }
  0x1c   :  { %107 = vperm.xlu0 %479, %v26_v8  }
  0x1e   :  { %103 = vperm.xlu1 %477, %v25_v6  }
  0x20   :  { %482 = vset.pattern.permute.xlu0 %v513_v12 }
  0x21   :  { %143 = vperm.xlu0 %482, %v21_v3  }
  0x22   :  { %478 = vset.pattern.permute.xlu1 %v512_v4 }
  0x23   :  { %65 = vperm.xlu1 %478, %v27_v9  }
  0x25   :  { %483 = vset.pattern.permute.xlu0 %v514_v13 }
  0x26   :  { %309 = vperm.xlu0 %483, %v20_v1  }
  0x27   :  { %480 = vset.pattern.permute.xlu1 %v511_v2 }
  0x28   :  { %111 = vperm.xlu1 %480, %v27_v9  }
  0x2a   :  { %317 = vperm.xlu0 %483, %v22_v0  }
  0x2c   :  { %481 = vset.pattern.permute.xlu1 %v513_v12 }
  0x2d   :  { %139 = vperm.xlu1 %481, %v20_v1  }
  0x2e   :  { %321 = vperm.xlu0 %483, %v23_v5  }
  0x31   :  { %147 = vperm.xlu1 %481, %v22_v0   ;;  %v137_v0 = vld [vmem:[%s625_s2 + $0x38] sm:$0xff] }
  0x32   :  { %325 = vperm.xlu0 %483, %v24_v7  }
  0x35   :  { %151 = vperm.xlu1 %481, %v23_v5  }
  0x36   :  { %329 = vperm.xlu0 %483, %v25_v6  }
  0x39   :  { %484 = vset.pattern.permute.xlu1 %v514_v13 }
  0x3a   :  { %313 = vperm.xlu1 %484, %v21_v3   ;;  %337 = vperm.xlu0 %483, %v27_v9  }
  0x3e   :  { %485 = vset.pattern.permute.xlu1 %v513_v12 }
  0x3f   :  { %155 = vperm.xlu1 %485, %v24_v7  }
  0x43   :  { %159 = vperm.xlu1 %485, %v25_v6  }
  0x47   :  { %163 = vperm.xlu1 %485, %v26_v8  }
  0x4b   :  { %167 = vperm.xlu1 %485, %v27_v9  }
  0x4f   :  { %486 = vset.pattern.permute.xlu1 %v514_v13 }
  0x50   :  { %333 = vperm.xlu1 %486, %v26_v8  }
  0x81   :  { %v84_v14 = vpop.permute.xlu1 %83  ;;  %v92_v15 = vpop.permute.xlu0 %91 }
  0x85   :  { %v88_v17 = vpop.permute.xlu1 %87 }
  0x86   :  { %v31_v18 = vpop.permute.xlu0 %30 }
  0x87   :  { %v74_v19 = vmul.f32 %v389_v16, %v31_v18 }
  0x89   :  { %v114_v22 = vadd.f32 %v84_v14, %v74_v19 }
  0x8a   :  { %v36_v20 = vpop.permute.xlu0 %35  ;;  %v46_v21 = vpop.permute.xlu1 %45 }
  0x8b   :  { %v75_v23 = vmul.f32 %v389_v16, %v36_v20  ;;  %v77_v25 = vmul.f32 %v389_v16, %v46_v21  ;;  %v122_v27 = vmax.f32 %v114_v22, 0.0 }
  0x8d   :  { %v115_v24 = vadd.f32 %v88_v17, %v75_v23 }
  0x8e   :  { %v41_v26 = vpop.permute.xlu0 %40 }
  0x8f   :  { %v123_v28 = vmax.f32 %v115_v24, 0.0  ;;  %v76_v29 = vmul.f32 %v389_v16, %v41_v26  ;;  %v96_v30 = vpop.permute.xlu1 %95 }
  0x90   :  { %v117_v31 = vadd.f32 %v96_v30, %v77_v25 }
  0x91   :  { %v442_v32 = vpack.c.bf16 %v123_v28, %v122_v27  ;;  %v116_v33 = vadd.f32 %v92_v15, %v76_v29 }
  0x92   :  { %v125_v34 = vmax.f32 %v117_v31, 0.0  ;;  %v56_v38 = vpop.permute.xlu0 %55 }
  0x93   :  { %v124_v35 = vmax.f32 %v116_v33, 0.0  ;;  %443 = vmatprep.subr.bf16.mxu0 %v442_v32  ;;  %458 = vmatprep.subr.bf16.mxu1 %v442_v32  ;;  %v79_v41 = vmul.f32 %v389_v16, %v56_v38 }
  0x94   :  { %v51_v36 = vpop.permute.xlu1 %50  ;;  %445 = vmatpush3.bf16.msra.mxu0 %v442_v32  ;;  %462 = vmatpush3.bf16.msra.mxu1 %v442_v32 }
  0x95   :  { %v446_v37 = vpack.c.bf16 %v125_v34, %v124_v35  ;;  %v78_v40 = vmul.f32 %v389_v16, %v51_v36 }
  0x96   :  { %v61_v43 = vpop.permute.xlu0 %60 }
  0x97   :  { %447 = vmatprep.subr.bf16.mxu0 %v446_v37  ;;  %459 = vmatprep.subr.bf16.mxu1 %v446_v37  ;;  %v80_v51 = vmul.f32 %v389_v16, %v61_v43 }
  0x98   :  { %449 = vmatpush3.bf16.msra.mxu0 %v446_v37  ;;  %463 = vmatpush3.bf16.msra.mxu1 %v446_v37 }
  0x99   :  { %v100_v39 = vpop.permute.xlu1 %99 }
  0x9a   :  { %v118_v42 = vadd.f32 %v100_v39, %v78_v40 }
  0x9b   :  { %v108_v50 = vpop.permute.xlu0 %107 }
  0x9c   :  { %v126_v46 = vmax.f32 %v118_v42, 0.0  ;;  %v120_v52 = vadd.f32 %v108_v50, %v80_v51 }
  0x9d   :  { %v104_v44 = vpop.permute.xlu1 %103 }
  0x9e   :  { %v119_v45 = vadd.f32 %v104_v44, %v79_v41  ;;  %v128_v56 = vmax.f32 %v120_v52, 0.0 }
  0xa0   :  { %v127_v47 = vmax.f32 %v119_v45, 0.0  ;;  %v144_v3 = vpop.permute.xlu0 %143 }
  0xa2   :  { %v450_v48 = vpack.c.bf16 %v127_v47, %v126_v46  ;;  %v66_v49 = vpop.permute.xlu1 %65 }
  0xa3   :  { %v81_v53 = vmul.f32 %v389_v16, %v66_v49 }
  0xa4   :  { %451 = vmatprep.subr.bf16.mxu0 %v450_v48  ;;  %460 = vmatprep.subr.bf16.mxu1 %v450_v48 }
  0xa5   :  { %453 = vmatpush3.bf16.msra.mxu0 %v450_v48  ;;  %464 = vmatpush3.bf16.msra.mxu1 %v450_v48  ;;  %v310_v5 = vpop.permute.xlu0 %309 }
  0xa7   :  { %v112_v54 = vpop.permute.xlu1 %111 }
  0xa8   :  { %v121_v55 = vadd.f32 %v112_v54, %v81_v53 }
  0xa9   :  { %v318_v7 = vpop.permute.xlu0 %317 }
  0xaa   :  { %v129_v57 = vmax.f32 %v121_v55, 0.0 }
  0xac   :  { %v454_v58 = vpack.c.bf16 %v129_v57, %v128_v56  ;;  %v140_v1 = vpop.permute.xlu1 %139 }
  0xad   :  { %v322_v9 = vpop.permute.xlu0 %321 }
  0xae   :  { %455 = vmatprep.subr.bf16.mxu0 %v454_v58  ;;  %461 = vmatprep.subr.bf16.mxu1 %v454_v58 }
  0xaf   :  { %457 = vmatpush3.bf16.msra.mxu0 %v454_v58  ;;  %465 = vmatpush3.bf16.msra.mxu1 %v454_v58 }
  0xb0   :  { %v148_v2 = vpop.permute.xlu1 %147 }
  0xb1   :  { %v326_v17 = vpop.permute.xlu0 %325 }
  0xb2   :  { %431 = vmatmul.mubr.msk.f32.vlgmr.msra.gmra.mrb[0].mxu0 %vm170_vm0, %v131_v59  ;;  %437 = vmatmul.mubr.msk.f32.vlgmr.msra.gmra.mrb[0].mxu1 %vm170_vm0, %v135_v60 }
  0xb3   :  { %433 = vmatprep.mubr.msk.f32.mxu0 %vm170_vm0, %v132_v61  ;;  %439 = vmatprep.mubr.msk.f32.mxu1 %vm170_vm0, %v136_v62 }
  0xb4   :  { %v152_v4 = vpop.permute.xlu1 %151 }
  0xb5   :  { %v330_v43 = vpop.permute.xlu0 %329 }
  0xb6   :  { %434 = vmatmul.mubr.msk.f32.gmra.mrb[2].mxu0 %vm170_vm0, %v133_v63  ;;  %440 = vmatmul.mubr.msk.f32.gmra.mrb[2].mxu1 %vm170_vm0, %v137_v0 }
  0xb9   :  { %v314_v6 = vpop.permute.xlu1 %313  ;;  %v338_v55 = vpop.permute.xlu0 %337 }
  0xbe   :  { %v156_v8 = vpop.permute.xlu1 %155 }
  0xc2   :  { %v160_v10 = vpop.permute.xlu1 %159 }
  0xc6   :  { %v164_v18 = vpop.permute.xlu1 %163 }
  0xca   :  { %v168_v37 = vpop.permute.xlu1 %167 }
  0xcf   :  { %v334_v48 = vpop.permute.xlu1 %333 }
 0x185   :  { %v432_v11 = vpop.f32.mrb[0].mxu0  ;;  %v438_v12 = vpop.f32.mrb[0].mxu1 }
 0x186   :  { %v267_v13 = vadd.f32 %v432_v11, %v144_v3  ;;  %v261_v14 = vpop.f32.mrb[1].mxu0  ;;  %v281_v15 = vpop.f32.mrb[1].mxu1  ;;  %v287_v28 = vadd.f32 %v438_v12, %v160_v10 }
 0x187   :  { %v262_v16 = vadd.f32 %v261_v14, %v140_v1  ;;  %v282_v21 = vadd.f32 %v281_v15, %v156_v8 }
 0x188   :  { %v301_v19 = vmax.f32 %v267_v13, 0.0  ;;  %v305_v39 = vmax.f32 %v287_v28, 0.0 }
 0x189   :  { %v300_v20 = vmax.f32 %v262_v16, 0.0  ;;  %v435_v22 = vpop.f32.mrb[2].mxu0  ;;  %v441_v23 = vpop.f32.mrb[2].mxu1  ;;  %v304_v34 = vmax.f32 %v282_v21, 0.0 }
 0x18a   :  { %v341_v24 = vmul.f32 %v314_v6, %v301_v19  ;;  %v277_v25 = vadd.f32 %v435_v22, %v152_v4  ;;  %v271_v26 = vpop.f32.mrb[3].mxu0  ;;  %v291_v27 = vpop.f32.mrb[3].mxu1  ;;  %v297_v41 = vadd.f32 %v441_v23, %v168_v37  ;;  %v345_v49 = vmul.f32 %v330_v43, %v305_v39 }
 0x18b   :  { %v340_v29 = vmul.f32 %v310_v5, %v300_v20  ;;  %v272_v30 = vadd.f32 %v271_v26, %v148_v2  ;;  %v292_v36 = vadd.f32 %v291_v27, %v164_v18  ;;  %v344_v44 = vmul.f32 %v326_v17, %v304_v34 }
 0x18c   :  { %v350_v31 = vsel %vm348_vm1, %v341_v24, 0.0  ;;  %v303_v32 = vmax.f32 %v277_v25, 0.0  ;;  %v307_v51 = vmax.f32 %v297_v41, 0.0  ;;  %v358_v57 = vsel %vm348_vm1, %v345_v49, 0.0 }
 0x18d   :  { %v349_v33 = vsel %vm348_vm1, %v340_v29, 0.0  ;;  %v302_v35 = vmax.f32 %v272_v30, 0.0  ;;  %v306_v46 = vmax.f32 %v292_v36, 0.0  ;;  %v356_v53 = vsel %vm348_vm1, %v344_v44, 0.0 }
 0x18e   :  { %v351_v38 = vadd.f32 %v350_v31, %v349_v33  ;;  %v343_v40 = vmul.f32 %v322_v9, %v303_v32  ;;  %v347_v58 = vmul.f32 %v338_v55, %v307_v51  ;;  %v371_v5 = vstv %s626_s3 }
 0x18f   :  { %v342_v42 = vmul.f32 %v318_v7, %v302_v35  ;;  %v346_v54 = vmul.f32 %v334_v48, %v306_v46 }
 0x190   :  { %v354_v50 = vsel %vm348_vm1, %v343_v40, 0.0  ;;  %v362_v62 = vsel %vm348_vm1, %v347_v58, 0.0 }
 0x191   :  { %v352_v45 = vsel %vm348_vm1, %v342_v42, 0.0  ;;  %v360_v60 = vsel %vm348_vm1, %v346_v54, 0.0 }
 0x192   :  { %v353_v47 = vadd.f32 %v352_v45, %v351_v38 }
 0x194   :  { %v355_v52 = vadd.f32 %v354_v50, %v353_v47 }
 0x196   :  { %v357_v56 = vadd.f32 %v356_v53, %v355_v52 }
 0x198   :  { %v359_v59 = vadd.f32 %v358_v57, %v357_v56 }
 0x19a   :  { %v361_v61 = vadd.f32 %v360_v60, %v359_v59 }
 0x19c   :  { %v363_v63 = vadd.f32 %v362_v62, %v361_v61 }
 0x19e   :  { %v364_v0 = vrot.slane %v363_v63, 4 }
 0x1a0   :  { %v365_v1 = vadd.f32 %v364_v0, %v363_v63 }
 0x1a2   :  { %v366_v2 = vrot.slane %v365_v1, 2 }
 0x1a4   :  { %v367_v3 = vadd.f32 %v366_v2, %v365_v1 }
 0x1a6   :  { %v368_v4 = vrot.slane %v367_v3, 1 }
 0x1a8   :  { %v369_v6 = vadd.f32 %v368_v4, %v367_v3 }
 0x1aa   :  { %v372_v7 = vadd.f32 %v371_v5, %v369_v6 }
 0x1ac   :  { %374 = vst.msk [vmem:[#allocation3] sm:$0x1] %vm373_vm2, %v372_v7 }
 0x1ad   :  { %498 = shalt.err (!%p495_p4)
}
 0x1ae   :  { %s499_s28 = scalar_lea.hbm %s627_s4, 16 }
 0x1af   :  { %p500_p5 = scmp.ne.s32.totalorder %s627_s4, %s499_s28  ;;  %p503_p6 = scmp.lt.u32.totalorder %s499_s28, %s627_s4 }
 0x1b1   :  { %p505_p7 = pnand %p503_p6, %p500_p5 }
 0x1b3   :  { %508 = shalt.err (!%p505_p7)
}
 0x1b4   :  { %384 = dma.vmem_to_hbm [thread:$0]  %s382_s23, 16, %s627_s4, [#allocation4]  }
 0x1b5   :  { %509 = dma.done.wait [#allocation4], 16  }
 0x1b6   :  { %510 = vsyncadd [#allocation4], 4294967280 }
 0x1b7   :  { %388 = vsyncpa [#allocation4], 1 }

</bundles_post_ra>
